<compile_context>
chip_gen: v6e
topology: v6e:2x2x1
jax: 0.10.0
libtpu: 0.0.40
codegen_flags: <defaults>
</compile_context>

<pallas_src>
import functools

import jax
import jax.numpy as jnp
from jax.experimental import pallas as pl
from jax.experimental.pallas import tpu as pltpu


def _ce_label_smooth_kernel(logits_ref, targets_ref, loss_ref, *,
                            num_classes: int, epsilon: float):
    # logits_ref: (TN, C), targets_ref: (TN, 1) int32, loss_ref: (TN, 1) f32
    x = logits_ref[...].astype(jnp.float32)
    t = targets_ref[...]

    # Stable log-sum-exp along the class (lane) axis.
    m = jnp.max(x, axis=1, keepdims=True)                      # (TN, 1)
    sum_exp = jnp.sum(jnp.exp(x - m), axis=1, keepdims=True)   # (TN, 1)
    lse = m + jnp.log(sum_exp)                                 # logsumexp per row

    # Target logit gathered via iota compare; row sum of logits for the smoothing term.
    cls = jax.lax.broadcasted_iota(jnp.int32, x.shape, 1)      # (TN, C)
    x_t = jnp.sum(jnp.where(cls == t, x, 0.0), axis=1, keepdims=True)
    sum_x = jnp.sum(x, axis=1, keepdims=True)

    # loss_i = logsumexp_i - (1-eps) * x[i, t_i] - (eps/C) * sum_c x[i, c]
    loss_ref[...] = (lse
                     - (1.0 - epsilon) * x_t
                     - (epsilon / num_classes) * sum_x)


def _round_up(x, m):
    return ((x + m - 1) // m) * m


def _choose_row_tile(n, c, itemsize):
    # Keep one logits block around ~4 MiB so double-buffered inputs + temporaries fit
    # comfortably inside the scoped VMEM budget on v5e / v6e / v7x.
    target_bytes = 4 * 1024 * 1024
    sub = 16 if itemsize < 4 else 8          # sublane packing for bf16 vs f32
    tn = target_bytes // max(1, c * itemsize)
    tn = max(sub, min(1024, (tn // sub) * sub))
    tn = min(tn, _round_up(n, sub))
    return tn


def cross_entropy_label_smooth(logits, targets, *, num_classes: int,
                               epsilon: float = 0.1, reduction: bool = True):
    """logits: (N, C) float (f32 or bf16), targets: (N,) int class indices."""
    n, c = logits.shape
    assert c == num_classes

    tn = _choose_row_tile(n, c, logits.dtype.itemsize)
    n_pad = _round_up(n, tn)
    num_tiles = n_pad // tn

    targets2d = targets.astype(jnp.int32).reshape(n, 1)
    if n_pad != n:
        # Padded rows produce a finite loss (log C) and are sliced off below.
        logits = jnp.pad(logits, ((0, n_pad - n), (0, 0)))
        targets2d = jnp.pad(targets2d, ((0, n_pad - n), (0, 0)))

    kernel = functools.partial(_ce_label_smooth_kernel,
                               num_classes=num_classes, epsilon=epsilon)

    per_row = pl.pallas_call(
        kernel,
        out_shape=jax.ShapeDtypeStruct((n_pad, 1), jnp.float32),
        grid_spec=pltpu.PrefetchScalarGridSpec(
            num_scalar_prefetch=0,
            grid=(num_tiles,),
            in_specs=[
                pl.BlockSpec((tn, c), lambda i: (i, 0)),
                pl.BlockSpec((tn, 1), lambda i: (i, 0)),
            ],
            out_specs=pl.BlockSpec((tn, 1), lambda i: (i, 0)),
        ),
        compiler_params=pltpu.CompilerParams(
            dimension_semantics=("parallel",),          # independent row tiles (v7x megacore)
            vmem_limit_bytes=48 * 1024 * 1024,          # above v5e/v6e/v7x scoped defaults
        ),
    )(logits, targets2d)

    per_row = per_row[:n, 0]
    if reduction:
        return jnp.sum(per_row) / n                     # mean over the true batch size
    return per_row


if __name__ == "__main__":
    # Small shapes consistent with the module: batch=8, num_classes=32
    N, C = 8, 32
    key = jax.random.PRNGKey(0)
    k_logits, k_targets = jax.random.split(key)
    logits = jax.random.normal(k_logits, (N, C), dtype=jnp.float32)
    targets = jax.random.randint(k_targets, (N,), 0, C, dtype=jnp.int32)

    loss = cross_entropy_label_smooth(logits, targets,
                                      num_classes=C, epsilon=0.1, reduction=True)
    loss = jax.block_until_ready(loss)

    per_row = cross_entropy_label_smooth(logits, targets,
                                         num_classes=C, epsilon=0.1, reduction=False)
    per_row = jax.block_until_ready(per_row)

    # Pure-JAX reference (matches the PyTorch module's formula).
    log_probs = jax.nn.log_softmax(logits, axis=1)
    one_hot = jax.nn.one_hot(targets, C, dtype=jnp.float32)
    smoothed = (1.0 - 0.1) * one_hot + 0.1 / C
    ref_rows = jnp.sum(-smoothed * log_probs, axis=1)
    ref_mean = jnp.mean(ref_rows)

    assert jnp.allclose(loss, ref_mean, rtol=1e-5, atol=1e-5), (loss, ref_mean)
    assert jnp.allclose(per_row, ref_rows, rtol=1e-5, atol=1e-5)

    print("KERNEL_OK")
</pallas_src>

<mosaic_0001>
module attributes {stable_mosaic.version = 11 : i64} {
  func.func @_ce_label_smooth_kernel(%arg0: i32, %arg1: memref<8x32xf32, #tpu.memory_space<vmem>>, %arg2: memref<8x1xi32, #tpu.memory_space<vmem>>, %arg3: memref<8x1xf32, #tpu.memory_space<vmem>>) attributes {dimension_semantics = [#tpu.dimension_semantics<parallel>], iteration_bounds = array<i64: 1>, scalar_prefetch = 0 : i64, scratch_operands = 0 : i64, tpu.core_type = #tpu.core_type<tc>, window_params = [{transform_indices = @transform_0, window_bounds = array<i64: 8, 32>}, {transform_indices = @transform_1, window_bounds = array<i64: 8, 1>}, {transform_indices = @transform_2, window_bounds = array<i64: 8, 1>}]} {
    %c0 = arith.constant 0 : index
    %c0_0 = arith.constant 0 : index
    %0 = vector.load %arg1[%c0, %c0_0] : memref<8x32xf32, #tpu.memory_space<vmem>>, vector<8x32xf32>
    %c0_1 = arith.constant 0 : index
    %c0_2 = arith.constant 0 : index
    %1 = vector.load %arg2[%c0_1, %c0_2] : memref<8x1xi32, #tpu.memory_space<vmem>>, vector<8x1xi32>
    %cst = arith.constant dense<0xFF800000> : vector<8xf32>
    %2 = vector.multi_reduction <maximumf>, %0, %cst [1] : vector<8x32xf32> to vector<8xf32>
    %3 = vector.shape_cast %2 : vector<8xf32> to vector<8x1xf32>
    %4 = vector.broadcast %3 : vector<8x1xf32> to vector<8x32xf32>
    %5 = arith.subf %0, %4 : vector<8x32xf32>
    %6 = math.exp %5 : vector<8x32xf32>
    %cst_3 = arith.constant dense<0.000000e+00> : vector<8xf32>
    %7 = vector.multi_reduction <add>, %6, %cst_3 [1] : vector<8x32xf32> to vector<8xf32>
    %8 = vector.shape_cast %7 : vector<8xf32> to vector<8x1xf32>
    %9 = math.log %8 : vector<8x1xf32>
    %10 = arith.addf %3, %9 : vector<8x1xf32>
    %11 = tpu.iota {dimensions = array<i32: 1>} : vector<8x32xi32>
    %12 = vector.broadcast %1 : vector<8x1xi32> to vector<8x32xi32>
    %13 = arith.cmpi eq, %11, %12 : vector<8x32xi32>
    %cst_4 = arith.constant 0.000000e+00 : f32
    %14 = vector.broadcast %cst_4 : f32 to vector<8x32xf32>
    %15 = arith.select %13, %0, %14 : vector<8x32xi1>, vector<8x32xf32>
    %cst_5 = arith.constant dense<0.000000e+00> : vector<8xf32>
    %16 = vector.multi_reduction <add>, %15, %cst_5 [1] : vector<8x32xf32> to vector<8xf32>
    %17 = vector.shape_cast %16 : vector<8xf32> to vector<8x1xf32>
    %cst_6 = arith.constant dense<0.000000e+00> : vector<8xf32>
    %18 = vector.multi_reduction <add>, %0, %cst_6 [1] : vector<8x32xf32> to vector<8xf32>
    %19 = vector.shape_cast %18 : vector<8xf32> to vector<8x1xf32>
    %cst_7 = arith.constant 0.899999976 : f32
    %20 = vector.broadcast %cst_7 : f32 to vector<8x1xf32>
    %21 = arith.mulf %20, %17 : vector<8x1xf32>
    %22 = arith.subf %10, %21 : vector<8x1xf32>
    %cst_8 = arith.constant 3.125000e-03 : f32
    %23 = vector.broadcast %cst_8 : f32 to vector<8x1xf32>
    %24 = arith.mulf %23, %19 : vector<8x1xf32>
    %25 = arith.subf %22, %24 : vector<8x1xf32>
    %c0_9 = arith.constant 0 : index
    %c0_10 = arith.constant 0 : index
    %26 = vector.load %arg3[%c0_9, %c0_10] : memref<8x1xf32, #tpu.memory_space<vmem>>, vector<8x1xf32>
    tpu.vector_store %arg3[%c0_9, %c0_10], %25 {strides = array<i32>} : memref<8x1xf32, #tpu.memory_space<vmem>>, vector<8x1xf32>,
    return
  }
  func.func @transform_0(%arg0: i32) -> (i32, i32) {
    %c0_i32 = arith.constant 0 : i32
    %c0_i32_0 = arith.constant 0 : i32
    return %arg0, %c0_i32 : i32, i32
  }
  func.func @transform_1(%arg0: i32) -> (i32, i32) {
    %c0_i32 = arith.constant 0 : i32
    %c0_i32_0 = arith.constant 0 : i32
    return %arg0, %c0_i32 : i32, i32
  }
  func.func @transform_2(%arg0: i32) -> (i32, i32) {
    %c0_i32 = arith.constant 0 : i32
    %c0_i32_0 = arith.constant 0 : i32
    return %arg0, %c0_i32 : i32, i32
  }
}

</mosaic_0001>

<bundles_post_ra>
// kernel: tpu_custom_call.1
= control target key start
LH: loop header
LB: loop body
LE: loop exit
PB: predicated region body
PF: predicated region fallthrough
CT: control target
= control target key end

     0   :  { %vm13_vm0 = vcmask 261120   ;;  %v55_v1 = vmov 0   ;;  %v26_v7 = vlaneseq  ;;  %vm43_vm2 = vcmask 7168   ;;  %s84_s0 = inlined_call_operand.vmem [shape: f32[8,32], index: 0, kind: input, shape index: {}]   ;;  %s85_s1 = inlined_call_operand.vmem [shape: s32[8,1], index: 1, kind: input, shape index: {}]   ;;  %s86_s2 = inlined_call_operand.vmem [shape: f32[8,1], index: 2, kind: output, shape index: {}]  }
   0x1   :  { %v11_v0 = vld [vmem:[%s84_s0] sm:$0xff]  ;;  %50 = vset.pattern.permute.xlu0 %v55_v1 }
   0x2   :  { %v14_v2 = vsel %vm13_vm0, %v11_v0, -inf  ;;  %v12_v3 = vld [vmem:[%s85_s1] sm:$0xff]  ;;  %v27_v8 = vand.u32 127, %v26_v7  ;;  %v36_v14 = vsel %vm13_vm0, %v11_v0, 0.0 }
   0x3   :  { %15 = vmax.xlane.f32.xlu0 %v14_v2 }
  0x19   :  { %29 = vperm.xlu0 %50, %v12_v3  }
  0x8c   :  { %v16_v4 = vpop.xlane.xlu0 %15 }
  0x8d   :  { %v17_v5 = vsub.f32 %v11_v0, %v16_v4 }
  0x8f   :  { %v18_v6 = vmul.f32 1.442695, %v17_v5 }
  0x91   :  { %51 = vpow2.f32 %v18_v6 }
  0x94   :  { %v30_v9 = vpop.permute.xlu0 %29 }
  0x95   :  { %vm31_vm1 = vcmp.eq.s32.totalorder %v27_v8, %v30_v9 }
  0x96   :  { %v32_v11 = vsel %vm31_vm1, %v11_v0, 0.0 }
  0x97   :  { %v33_v13 = vsel %vm13_vm0, %v32_v11, 0.0 }
  0x9e   :  { %v52_v10 = vpop.eup %51 }
  0x9f   :  { %v20_v12 = vsel %vm13_vm0, %v52_v10, 0.0 }
  0xa0   :  { %21 = vadd.xlane.f32.xlu1 %v20_v12 }
  0xa4   :  { %34 = vadd.xlane.f32.xlu1 %v33_v13 }
  0xa8   :  { %37 = vadd.xlane.f32.xlu1 %v36_v14 }
 0x129   :  { %v22_v15 = vpop.xlane.xlu1 %21 }
 0x12a   :  { %53 = vlog2.f32 %v22_v15 }
 0x12d   :  { %v35_v16 = vpop.xlane.xlu1 %34 }
 0x12e   :  { %v39_v21 = vmul.f32 0.9, %v35_v16 }
 0x131   :  { %v38_v18 = vpop.xlane.xlu1 %37 }
 0x132   :  { %v41_v22 = vmul.f32 0.003125, %v38_v18 }
 0x137   :  { %v54_v17 = vpop.eup %53 }
 0x138   :  { %v24_v19 = vmul.f32 0.6931472, %v54_v17 }
 0x13a   :  { %v25_v20 = vadd.f32 %v24_v19, %v16_v4 }
 0x13c   :  { %v40_v23 = vsub.f32 %v25_v20, %v39_v21 }
 0x13e   :  { %v42_v24 = vsub.f32 %v40_v23, %v41_v22 }
 0x140   :  { %44 = vst.msk [vmem:[%s86_s2] sm:$0xff] %vm43_vm2, %v42_v24 }

</bundles_post_ra>
